<compile_context>
chip_gen: v7x
topology: tpu7x:2x2x1
jax: 0.10.0
libtpu: 0.0.40
codegen_flags: <defaults>
</compile_context>

<pallas_src>
import functools

import jax
import jax.numpy as jnp
from jax import lax
from jax.experimental import pallas as pl
from jax.experimental.pallas import tpu as pltpu

_LANE = 128


def _round_up(v, m):
    return ((v + m - 1) // m) * m


def _mlp_kernel(x_ref, w1_ref, b1_ref, w2_ref, b2_ref, o_ref):
    # x_ref:  (TB, H)      bf16   -- one batch tile
    # w1_ref: (H, H)       bf16   -- PyTorch (out, in) layout, VMEM-resident
    # b1_ref: (1, H)       f32
    # w2_ref: (CPAD, H)    bf16   -- output dim zero-padded to a 128 multiple
    # b2_ref: (1, CPAD)    f32
    # o_ref:  (TB, CPAD)   f32    -- lane-dense output slab
    x = x_ref[...]

    # Linear 1: contract x's feature dim with w1's "in" dim (no transpose needed).
    h = lax.dot_general(
        x, w1_ref[...],
        dimension_numbers=(((1,), (1,)), ((), ())),
        preferred_element_type=jnp.float32,
    ) + b1_ref[...]
    h = jnp.maximum(h, 0.0).astype(jnp.bfloat16)   # ReLU; bf16 for the 2nd MXU pass

    # Dropout: identity (eval / inference mode).

    out = lax.dot_general(
        h, w2_ref[...],
        dimension_numbers=(((1,), (1,)), ((), ())),
        preferred_element_type=jnp.float32,
    ) + b2_ref[...]
    o_ref[...] = out.astype(o_ref.dtype)


def prepare_params(w1, b1, w2, b2):
    """One-time parameter prep (do at load time, NOT per forward call):
    cast weights to bf16, keep PyTorch (out, in) layout, pad the classifier
    output dim up to a lane-dense multiple of 128, make biases 2-D f32."""
    H = w1.shape[0]
    C = w2.shape[0]
    c_pad = _round_up(max(C, 1), _LANE)
    w1_p = w1.astype(jnp.bfloat16)                                  # (H, H)
    b1_p = b1.reshape(1, H).astype(jnp.float32)                     # (1, H)
    w2_p = jnp.zeros((c_pad, H), jnp.bfloat16).at[:C].set(w2.astype(jnp.bfloat16))
    b2_p = jnp.zeros((1, c_pad), jnp.float32).at[0, :C].set(b2.astype(jnp.float32))
    return w1_p, b1_p, w2_p, b2_p


@functools.partial(jax.jit, static_argnames=("num_classes", "block_b"))
def classifier_network_forward(x, w1_p, b1_p, w2_p, b2_p, *, num_classes, block_b=512):
    """x: (B, H) f32/bf16, H = num_classes * patches.
    w1_p/b1_p/w2_p/b2_p: outputs of prepare_params. Returns (B, num_classes) f32."""
    B, H = x.shape
    c_pad = w2_p.shape[0]

    # Batch tile: at least 8 rows (sublane multiple), up to block_b for pipelining.
    tb = min(block_b, _round_up(max(B, 8), 8))
    b_pad = _round_up(max(B, tb), tb)

    x_bf16 = x.astype(jnp.bfloat16)
    if b_pad != B:
        x_bf16 = jnp.pad(x_bf16, ((0, b_pad - B), (0, 0)))

    grid = (b_pad // tb,)
    flops = 2 * b_pad * H * (H + c_pad)
    bytes_accessed = (
        x_bf16.size * 2 + w1_p.size * 2 + w2_p.size * 2
        + b1_p.size * 4 + b2_p.size * 4 + b_pad * c_pad * 4
    )

    out_pad = pl.pallas_call(
        _mlp_kernel,
        out_shape=jax.ShapeDtypeStruct((b_pad, c_pad), jnp.float32),
        grid=grid,
        in_specs=[
            pl.BlockSpec((tb, H), lambda i: (i, 0)),      # x: pipelined over batch tiles
            pl.BlockSpec((H, H), lambda i: (0, 0)),       # w1: VMEM-resident
            pl.BlockSpec((1, H), lambda i: (0, 0)),       # b1: VMEM-resident
            pl.BlockSpec((c_pad, H), lambda i: (0, 0)),   # w2 (lane-dense padded)
            pl.BlockSpec((1, c_pad), lambda i: (0, 0)),   # b2 (lane-dense padded)
        ],
        out_specs=pl.BlockSpec((tb, c_pad), lambda i: (i, 0)),
        compiler_params=pltpu.CompilerParams(
            dimension_semantics=("parallel",),
        ),
        cost_estimate=pl.CostEstimate(
            flops=flops, transcendentals=0, bytes_accessed=bytes_accessed),
    )(x_bf16, w1_p, b1_p, w2_p, b2_p)

    return out_pad[:B, :num_classes]


def _reference(x, w1, b1, w2, b2):
    h = jnp.maximum(x @ w1.T + b1, 0.0)
    return h @ w2.T + b2


if __name__ == "__main__":
    # Shapes consistent with the module: num_classes=4, patches=8 -> hidden=32.
    num_classes = 4
    patches = 8
    hidden = num_classes * patches          # 32
    batch = 2

    key = jax.random.PRNGKey(0)
    kx, k1, k2, k3, k4 = jax.random.split(key, 5)

    x = jax.random.normal(kx, (batch, hidden), dtype=jnp.float32)
    # PyTorch Linear layout: weight (out, in), bias (out,)
    bound1 = 1.0 / (hidden ** 0.5)
    w1 = jax.random.uniform(k1, (hidden, hidden), jnp.float32, -bound1, bound1)
    b1 = jax.random.uniform(k2, (hidden,), jnp.float32, -bound1, bound1)
    w2 = jax.random.uniform(k3, (num_classes, hidden), jnp.float32, -bound1, bound1)
    b2 = jax.random.uniform(k4, (num_classes,), jnp.float32, -bound1, bound1)

    # One-time weight prep (bf16 cast + lane padding), then the gridded forward.
    w1_p, b1_p, w2_p, b2_p = prepare_params(w1, b1, w2, b2)
    out = classifier_network_forward(x, w1_p, b1_p, w2_p, b2_p,
                                     num_classes=num_classes)
    out = jax.block_until_ready(out)

    ref = _reference(x, w1, b1, w2, b2)
    assert out.shape == (batch, num_classes)
    # bf16 operands with f32 accumulation -> loosen tolerance vs the f32 reference.
    assert jnp.allclose(out, ref, atol=2e-2, rtol=2e-2), "mismatch vs reference"

    print("KERNEL_OK")
</pallas_src>

<mosaic_0001>
module attributes {stable_mosaic.version = 11 : i64} {
  func.func @_mlp_kernel(%arg0: i32, %arg1: memref<8x32xbf16, #tpu.memory_space<vmem>>, %arg2: memref<32x32xbf16, #tpu.memory_space<vmem>>, %arg3: memref<1x32xf32, #tpu.memory_space<vmem>>, %arg4: memref<128x32xbf16, #tpu.memory_space<vmem>>, %arg5: memref<1x128xf32, #tpu.memory_space<vmem>>, %arg6: memref<8x128xf32, #tpu.memory_space<vmem>>) attributes {dimension_semantics = [#tpu.dimension_semantics<parallel>], iteration_bounds = array<i64: 1>, scalar_prefetch = 0 : i64, scratch_operands = 0 : i64, tpu.core_type = #tpu.core_type<tc>, window_params = [{transform_indices = @transform_0, window_bounds = array<i64: 8, 32>}, {pipeline_mode = #tpu.pipeline_mode<synchronous>, transform_indices = @transform_1, window_bounds = array<i64: 32, 32>}, {pipeline_mode = #tpu.pipeline_mode<synchronous>, transform_indices = @transform_2, window_bounds = array<i64: 1, 32>}, {pipeline_mode = #tpu.pipeline_mode<synchronous>, transform_indices = @transform_3, window_bounds = array<i64: 128, 32>}, {pipeline_mode = #tpu.pipeline_mode<synchronous>, transform_indices = @transform_4, window_bounds = array<i64: 1, 128>}, {transform_indices = @transform_5, window_bounds = array<i64: 8, 128>}]} {
    %c0 = arith.constant 0 : index
    %c0_0 = arith.constant 0 : index
    %0 = vector.load %arg1[%c0, %c0_0] : memref<8x32xbf16, #tpu.memory_space<vmem>>, vector<8x32xbf16>
    %c0_1 = arith.constant 0 : index
    %c0_2 = arith.constant 0 : index
    %1 = vector.load %arg2[%c0_1, %c0_2] : memref<32x32xbf16, #tpu.memory_space<vmem>>, vector<32x32xbf16>
    %cst = arith.constant dense<0.000000e+00> : vector<8x32xf32>
    %2 = tpu.matmul %0, %1, %cst {dimension_numbers = #tpu.dot_dimension_numbers<[1], [1], [0], [0], [0, 0, 1, 0], [], []>} : vector<8x32xbf16>, vector<32x32xbf16>, vector<8x32xf32> -> vector<8x32xf32>
    %c0_3 = arith.constant 0 : index
    %c0_4 = arith.constant 0 : index
    %3 = vector.load %arg3[%c0_3, %c0_4] : memref<1x32xf32, #tpu.memory_space<vmem>>, vector<1x32xf32>
    %4 = vector.broadcast %3 : vector<1x32xf32> to vector<8x32xf32>
    %5 = arith.addf %2, %4 : vector<8x32xf32>
    %cst_5 = arith.constant 0.000000e+00 : f32
    %6 = vector.broadcast %cst_5 : f32 to vector<8x32xf32>
    %7 = arith.maximumf %5, %6 : vector<8x32xf32>
    %8 = arith.truncf %7 : vector<8x32xf32> to vector<8x32xbf16>
    %c0_6 = arith.constant 0 : index
    %c0_7 = arith.constant 0 : index
    %9 = vector.load %arg4[%c0_6, %c0_7] : memref<128x32xbf16, #tpu.memory_space<vmem>>, vector<128x32xbf16>
    %cst_8 = arith.constant dense<0.000000e+00> : vector<8x128xf32>
    %10 = tpu.matmul %8, %9, %cst_8 {dimension_numbers = #tpu.dot_dimension_numbers<[1], [1], [0], [0], [0, 0, 1, 0], [], []>} : vector<8x32xbf16>, vector<128x32xbf16>, vector<8x128xf32> -> vector<8x128xf32>
    %c0_9 = arith.constant 0 : index
    %c0_10 = arith.constant 0 : index
    %11 = vector.load %arg5[%c0_9, %c0_10] : memref<1x128xf32, #tpu.memory_space<vmem>>, vector<1x128xf32>
    %12 = vector.broadcast %11 : vector<1x128xf32> to vector<8x128xf32>
    %13 = arith.addf %10, %12 : vector<8x128xf32>
    %c0_11 = arith.constant 0 : index
    %c0_12 = arith.constant 0 : index
    %14 = vector.load %arg6[%c0_11, %c0_12] : memref<8x128xf32, #tpu.memory_space<vmem>>, vector<8x128xf32>
    tpu.vector_store %arg6[%c0_11, %c0_12], %13 {strides = array<i32>} : memref<8x128xf32, #tpu.memory_space<vmem>>, vector<8x128xf32>,
    return
  }
  func.func @transform_0(%arg0: i32) -> (i32, i32) {
    %c0_i32 = arith.constant 0 : i32
    %c0_i32_0 = arith.constant 0 : i32
    return %arg0, %c0_i32 : i32, i32
  }
  func.func @transform_1(%arg0: i32) -> (i32, i32) {
    %c0_i32 = arith.constant 0 : i32
    %c0_i32_0 = arith.constant 0 : i32
    %c0_i32_1 = arith.constant 0 : i32
    return %c0_i32, %c0_i32_0 : i32, i32
  }
  func.func @transform_2(%arg0: i32) -> (i32, i32) {
    %c0_i32 = arith.constant 0 : i32
    %c0_i32_0 = arith.constant 0 : i32
    %c0_i32_1 = arith.constant 0 : i32
    return %c0_i32, %c0_i32_0 : i32, i32
  }
  func.func @transform_3(%arg0: i32) -> (i32, i32) {
    %c0_i32 = arith.constant 0 : i32
    %c0_i32_0 = arith.constant 0 : i32
    %c0_i32_1 = arith.constant 0 : i32
    return %c0_i32, %c0_i32_0 : i32, i32
  }
  func.func @transform_4(%arg0: i32) -> (i32, i32) {
    %c0_i32 = arith.constant 0 : i32
    %c0_i32_0 = arith.constant 0 : i32
    %c0_i32_1 = arith.constant 0 : i32
    return %c0_i32, %c0_i32_0 : i32, i32
  }
  func.func @transform_5(%arg0: i32) -> (i32, i32) {
    %c0_i32 = arith.constant 0 : i32
    %c0_i32_0 = arith.constant 0 : i32
    return %arg0, %c0_i32 : i32, i32
  }
}

</mosaic_0001>

<bundles_post_ra>
// kernel: classifier_network_forward.1
= control target key start
LH: loop header
LB: loop body
LE: loop exit
PB: predicated region body
PF: predicated region fallthrough
CT: control target
= control target key end

     0   :  { %vm43_vm0 = vcmask 261120   ;;  %v296_v0 = vmov 0.0   ;;  %vm297_vm1 = vmmov 0   ;;  %s382_s1 = inlined_call_operand.vmem [shape: bf16[32,32], index: 1, kind: input, shape index: {}]   ;;  %s383_s3 = inlined_call_operand.vmem [shape: bf16[128,32], index: 3, kind: input, shape index: {}]   ;;  %s384_s0 = inlined_call_operand.vmem [shape: bf16[8,32], index: 0, kind: input, shape index: {}]   ;;  %s385_s2 = inlined_call_operand.vmem [shape: f32[1,32], index: 2, kind: input, shape index: {}]   ;;  %s386_s4 = inlined_call_operand.vmem [shape: f32[1,128], index: 4, kind: input, shape index: {}]   ;;  %s387_s5 = inlined_call_operand.vmem [shape: f32[8,128], index: 5, kind: output, shape index: {}]  }
   0x1   :  { %256 = vmatprep.subr.bf16.mxu0 %v296_v0  ;;  %v286_v1 = vld [vmem:[%s382_s1] sm:$0xff]   ;;  %260 = vmatprep.mubr.msk.bf16.mxu0 %vm297_vm1, %v296_v0  ;;  %v287_v4 = vld [vmem:[%s382_s1 + $0x8] sm:$0xff]   ;;  %v290_v9 = vld [vmem:[%s383_s3 + $0x10] sm:$0xff]  }
   0x2   :  { %264 = vmatprep.subr.bf16.mxu1 %v296_v0  ;;  %280 = vmatprep.mubr.msk.bf16.mxu1 %vm297_vm1, %v296_v0  ;;  %v48_v2 = vsel %vm43_vm0, %v286_v1, 0  ;;  %v288_v3 = vld [vmem:[%s383_s3] sm:$0xff]   ;;  %v289_v6 = vld [vmem:[%s383_s3 + $0x8] sm:$0xff]   ;;  %v51_v7 = vsel %vm43_vm0, %v287_v4, 0  ;;  %v168_v11 = vsel %vm43_vm0, %v290_v9, 0  ;;  %v291_v12 = vld [vmem:[%s383_s3 + $0x18] sm:$0xff]  }
   0x3   :  { %257 = vmatpush3.bf16.xpose.msra.mxu0 %v48_v2  ;;  %v162_v5 = vsel %vm43_vm0, %v288_v3, 0  ;;  %v165_v8 = vsel %vm43_vm0, %v289_v6, 0  ;;  %v21_v10 = vld [vmem:[%s384_s0] sm:$0xf]  ;;  %v171_v13 = vsel %vm43_vm0, %v291_v12, 0  ;;  %v293_v16 = vld [vmem:[%s383_s3 + $0x28] sm:$0xff]  }
   0x4   :  { %258 = vmatprep.subr.bf16.mxu0 %v296_v0  ;;  %265 = vmatpush3.bf16.xpose.msra.mxu1 %v162_v5  ;;  %v292_v14 = vld [vmem:[%s383_s3 + $0x20] sm:$0xff]   ;;  %v177_v17 = vsel %vm43_vm0, %v293_v16, 0  ;;  %v294_v18 = vld [vmem:[%s383_s3 + $0x30] sm:$0xff]   ;;  %v295_v20 = vld [vmem:[%s383_s3 + $0x38] sm:$0xff]  }
   0x5   :  { %266 = vmatprep.subr.bf16.mxu1 %v296_v0  ;;  %v174_v15 = vsel %vm43_vm0, %v292_v14, 0  ;;  %v180_v19 = vsel %vm43_vm0, %v294_v18, 0  ;;  %v183_v21 = vsel %vm43_vm0, %v295_v20, 0  ;;  %v230_v22 = vld [vmem:[%s385_s2] ss:$0 sm:$0xff] }
   0x6   :  { %v234_v30 = vld [vmem:[%s386_s4] ss:$0 sm:$0xff] }
   0xb   :  { %259 = vmatpush3.bf16.xpose.msra.mxu0 %v51_v7 }
   0xc   :  { %267 = vmatpush3.bf16.xpose.msra.mxu1 %v165_v8 }
   0xd   :  { %268 = vmatprep.subr.bf16.mxu1 %v296_v0 }
  0x12   :  { %261 = vmatmul.mubr.msk.bf16.vlgmr.msra.gmra.mrb[0].mxu0 %vm43_vm0, %v21_v10 }
  0x14   :  { %269 = vmatpush3.bf16.xpose.msra.mxu1 %v168_v11 }
  0x15   :  { %270 = vmatprep.subr.bf16.mxu1 %v296_v0 }
  0x1c   :  { %271 = vmatpush3.bf16.xpose.msra.mxu1 %v171_v13 }
  0x1d   :  { %272 = vmatprep.subr.bf16.mxu1 %v296_v0 }
  0x24   :  { %273 = vmatpush3.bf16.xpose.msra.mxu1 %v174_v15 }
  0x25   :  { %274 = vmatprep.subr.bf16.mxu1 %v296_v0 }
  0x2c   :  { %275 = vmatpush3.bf16.xpose.msra.mxu1 %v177_v17 }
  0x2d   :  { %276 = vmatprep.subr.bf16.mxu1 %v296_v0 }
  0x34   :  { %277 = vmatpush3.bf16.xpose.msra.mxu1 %v180_v19 }
  0x35   :  { %278 = vmatprep.subr.bf16.mxu1 %v296_v0 }
  0x3c   :  { %279 = vmatpush3.bf16.xpose.msra.mxu1 %v183_v21 }
  0xe5   :  { %v87_v23 = vpop.f32.mrb[0].mxu0 }
  0xe6   :  { %v88_v24 = vadd.f32 %v230_v22, %v87_v23  ;;  %v262_v25 = vpop.f32.mrb[1].mxu0 }
  0xe7   :  { %v90_v26 = vpop.f32.mrb[2].mxu0 }
  0xe8   :  { %v93_v27 = vmax.f32 %v88_v24, 0.0  ;;  %v263_v28 = vpop.f32.mrb[3].mxu0 }
  0xea   :  { %v94_v29 = vpack.c.bf16 %v93_v27, %v93_v27 }
  0xec   :  { %281 = vmatmul.mubr.msk.bf16.vlgmr.msra.gmra.mrb[0].mxu1 %vm43_vm0, %v94_v29 }
 0x1bf   :  { %v219_v31 = vpop.f32.mrb[0].mxu1 }
 0x1c0   :  { %v220_v32 = vadd.f32 %v234_v30, %v219_v31  ;;  %v282_v33 = vpop.f32.mrb[1].mxu1 }
 0x1c1   :  { %v222_v34 = vpop.f32.mrb[2].mxu1 }
 0x1c2   :  { %225 = vst [vmem:[%s387_s5] sm:$0xff] %v220_v32  ;;  %v283_v35 = vpop.f32.mrb[3].mxu1 }

</bundles_post_ra>
